<compile_context>
chip_gen: v7x
topology: tpu7x:2x2x1
jax: 0.10.0
libtpu: 0.0.40
codegen_flags: <defaults>
</compile_context>

<pallas_src>
import jax
import jax.numpy as jnp
from jax.experimental import pallas as pl
from jax.experimental.pallas import tpu as pltpu


def _round_up(x, m):
    return ((x + m - 1) // m) * m


def _cdiv(a, b):
    return -(-a // b)


def critic_kernel(obs_ref, w1_ref, b1_ref, w2_ref, b2_ref, out_ref):
    # obs_ref : (P*obs_dim_pad, TILE_R) bf16   packed, transposed obs tile
    # w1_ref  : (P*hidden, P*obs_dim_pad) bf16 block-diagonal W1 (feat-padded)
    # b1_ref  : (P*hidden, 1) f32
    # w2_ref  : (P, P*hidden) bf16             block-diagonal critic head
    # b2_ref  : (1, 1) f32
    # out_ref : (P, TILE_R) f32 ; out[j, r] = value of batch element P*r + j
    h = jnp.dot(w1_ref[...], obs_ref[...], preferred_element_type=jnp.float32)
    h = jnp.maximum(h + b1_ref[...], 0.0)        # preprocess: Linear + ReLU
    h = h.astype(jnp.bfloat16)                   # halve the big intermediate
    v = jnp.dot(w2_ref[...], h, preferred_element_type=jnp.float32)
    out_ref[...] = (v + b2_ref[...]).astype(out_ref.dtype)


def _pack_factor(obs_dim, hidden):
    """Lane-packing factor: fold P batch elements into the 128-lane axis.

    obs_dim is feature-padded up to the next divisor of 128 so the packed
    width P*obs_dim_pad stays lane-dense; P is capped so a large `hidden`
    never flips the kernel MXU-/VMEM-bound (block-diag W1 multiplies FLOPs
    and the h width by P).
    """
    if obs_dim > 128:
        return obs_dim, 1
    obs_dim_pad = 1
    while obs_dim_pad < obs_dim:
        obs_dim_pad *= 2            # divisors of 128 are powers of two <= 128
    P = 128 // obs_dim_pad
    cap = max(1, 512 // hidden)
    while P > 1 and P > cap:
        P //= 2
    return obs_dim_pad, P


def make_critic_forward(w1, b1, w2, b2, *, tile_rows=8192,
                        vmem_limit_bytes=48 * 1024 * 1024):
    """Build a jitted critic forward pass closed over pre-packed weights.

    w1: [hidden, obs_dim], b1: [hidden], w2: [1, hidden], b2: [1]
    (PyTorch nn.Linear conventions).  The returned fn maps obs [B, obs_dim]
    -> value estimates [B] (matching `.squeeze(-1)` of the reference module).
    """
    hidden, obs_dim = w1.shape
    obs_dim_pad, P = _pack_factor(obs_dim, hidden)

    # ---- Hoisted: packed block-diagonal weights (once per weight update). ----
    w1_pad = jnp.zeros((hidden, obs_dim_pad), jnp.float32)
    w1_pad = w1_pad.at[:, :obs_dim].set(jnp.asarray(w1, jnp.float32))
    eye_p = jnp.eye(P, dtype=jnp.float32)
    w1_bd = jnp.kron(eye_p, w1_pad).astype(jnp.bfloat16)   # (P*hidden, P*obs_dim_pad)
    w2_bd = jnp.kron(eye_p, jnp.asarray(w2, jnp.float32)).astype(jnp.bfloat16)  # (P, P*hidden)
    b1_t = jnp.tile(jnp.asarray(b1, jnp.float32), P).reshape(P * hidden, 1)
    b2_2d = jnp.asarray(b2, jnp.float32).reshape(1, 1)

    def forward(obs):
        B, od = obs.shape
        assert od == obs_dim, (od, obs_dim)
        rows = _cdiv(B, P)
        b_pad = rows * P

        # Kernel is HBM-bound on the obs stream: feed it as bf16.  The cast /
        # remainder-row + feature pad / pack-transpose below fuse into one XLA
        # pass under jit (free when obs is already produced packed/bf16).
        x = obs.astype(jnp.bfloat16)
        if b_pad != B or obs_dim_pad != obs_dim:
            x = jnp.pad(x, ((0, b_pad - B), (0, obs_dim_pad - obs_dim)))
        obs_t = x.reshape(rows, P * obs_dim_pad).T        # (P*obs_dim_pad, rows)

        # ---- Tile sizing ----
        tile_r = min(tile_rows, _round_up(rows, 128))
        if rows > 256:
            # >= 2 grid steps so ("parallel",) can use both v7x TensorCores
            # (neutral on single-TC v5e/v6e).
            tile_r = min(tile_r, _round_up(_cdiv(rows, 2), 128))
        # Keep the per-tile VMEM footprint well under v7x's 64 MiB physical.
        bytes_per_lane = (2 * 2 * P * obs_dim_pad     # obs tile, bf16, 2 bufs
                          + (4 + 2) * P * hidden      # h (f32) + bf16 copy
                          + 2 * 4 * 8)                # out tile, f32, 2 bufs
        while tile_r > 128 and tile_r * bytes_per_lane > 20 * 1024 * 1024:
            tile_r = _round_up(tile_r // 2, 128)

        grid = (_cdiv(rows, tile_r),)   # ragged last block handled by Pallas;
                                        # tail outputs are clipped / sliced away

        out = pl.pallas_call(
            critic_kernel,
            out_shape=jax.ShapeDtypeStruct((P, rows), jnp.float32),
            grid_spec=pltpu.PrefetchScalarGridSpec(
                num_scalar_prefetch=0,
                grid=grid,
                in_specs=[
                    pl.BlockSpec((P * obs_dim_pad, tile_r), lambda i: (0, i)),   # obs
                    pl.BlockSpec((P * hidden, P * obs_dim_pad), lambda i: (0, 0)),
                    pl.BlockSpec((P * hidden, 1), lambda i: (0, 0)),
                    pl.BlockSpec((P, P * hidden), lambda i: (0, 0)),
                    pl.BlockSpec((1, 1), lambda i: (0, 0)),
                ],
                out_specs=pl.BlockSpec((P, tile_r), lambda i: (0, i)),
            ),
            compiler_params=pltpu.CompilerParams(
                dimension_semantics=("parallel",),   # batch axis -> both v7x TCs
                vmem_limit_bytes=vmem_limit_bytes,   # above v5e(16M)/v6e(32M)
                                                     # scoped defaults; safe
                                                     # under v7x's 64M physical
            ),
        )(obs_t, w1_bd, b1_t, w2_bd, b2_2d)

        # out[j, r] = value of batch element P*r + j -> transpose + flatten.
        return out.T.reshape(b_pad)[:B]

    return jax.jit(forward)


def _reference(obs, w1, b1, w2, b2):
    h = jnp.maximum(obs @ w1.T + b1, 0.0)
    return (h @ w2.T + b2)[:, 0]


def _make_params(key, B, obs_dim, hidden):
    k_obs, k_w1, k_b1, k_w2, k_b2 = jax.random.split(key, 5)
    obs = jax.random.normal(k_obs, (B, obs_dim), dtype=jnp.float32)
    lim1 = 1.0 / jnp.sqrt(obs_dim)
    w1 = jax.random.uniform(k_w1, (hidden, obs_dim), jnp.float32, -lim1, lim1)
    b1 = jax.random.uniform(k_b1, (hidden,), jnp.float32, -lim1, lim1)
    lim2 = 1.0 / jnp.sqrt(hidden)
    w2 = jax.random.uniform(k_w2, (1, hidden), jnp.float32, -lim2, lim2)
    b2 = jax.random.uniform(k_b2, (1,), jnp.float32, -lim2, lim2)
    return obs, w1, b1, w2, b2


if __name__ == "__main__":
    key = jax.random.PRNGKey(0)

    # (a) packed P=8, aligned batch;  (b) packed, ragged batch (B % P != 0);
    # (c) feature-padded packing (obs_dim 24 -> 32, P=4);
    # (d) multiple grid steps + ragged last tile.
    configs = [
        (8, 16, 32),
        (37, 16, 32),
        (37, 24, 32),
        (2500, 16, 32),
    ]

    for idx, (B, obs_dim, hidden) in enumerate(configs):
        cfg_key = jax.random.fold_in(key, idx)
        obs, w1, b1, w2, b2 = _make_params(cfg_key, B, obs_dim, hidden)

        forward = make_critic_forward(w1, b1, w2, b2)
        out = jax.block_until_ready(forward(obs))
        ref = _reference(obs, w1, b1, w2, b2)

        assert out.shape == (B,), (out.shape, B)
        # Tolerance accounts for the bf16 obs/weight feed (the MXU already uses
        # bf16 operands at default precision) vs. the f32 XLA reference.
        max_err = float(jnp.max(jnp.abs(out - ref)))
        assert jnp.allclose(out, ref, atol=3e-2, rtol=3e-2), (
            f"mismatch for config {(B, obs_dim, hidden)}: max abs err {max_err}"
        )

    print("KERNEL_OK")
</pallas_src>

<mosaic_0001>
module attributes {stable_mosaic.version = 11 : i64} {
  func.func @critic_kernel(%arg0: i32, %arg1: memref<128x128xbf16, #tpu.memory_space<vmem>>, %arg2: memref<256x128xbf16, #tpu.memory_space<vmem>>, %arg3: memref<256x1xf32, #tpu.memory_space<vmem>>, %arg4: memref<8x256xbf16, #tpu.memory_space<vmem>>, %arg5: memref<1x1xf32, #tpu.memory_space<vmem>>, %arg6: memref<8x128xf32, #tpu.memory_space<vmem>>) attributes {dimension_semantics = [#tpu.dimension_semantics<parallel>], iteration_bounds = array<i64: 1>, scalar_prefetch = 0 : i64, scratch_operands = 0 : i64, tpu.core_type = #tpu.core_type<tc>, window_params = [{transform_indices = @transform_0, window_bounds = array<i64: 128, 128>}, {pipeline_mode = #tpu.pipeline_mode<synchronous>, transform_indices = @transform_1, window_bounds = array<i64: 256, 128>}, {pipeline_mode = #tpu.pipeline_mode<synchronous>, transform_indices = @transform_2, window_bounds = array<i64: 256, 1>}, {pipeline_mode = #tpu.pipeline_mode<synchronous>, transform_indices = @transform_3, window_bounds = array<i64: 8, 256>}, {pipeline_mode = #tpu.pipeline_mode<synchronous>, transform_indices = @transform_4, window_bounds = array<i64: 1, 1>}, {transform_indices = @transform_5, window_bounds = array<i64: 8, 128>}]} {
    %c0 = arith.constant 0 : index
    %c0_0 = arith.constant 0 : index
    %0 = vector.load %arg2[%c0, %c0_0] : memref<256x128xbf16, #tpu.memory_space<vmem>>, vector<256x128xbf16>
    %c0_1 = arith.constant 0 : index
    %c0_2 = arith.constant 0 : index
    %1 = vector.load %arg1[%c0_1, %c0_2] : memref<128x128xbf16, #tpu.memory_space<vmem>>, vector<128x128xbf16>
    %cst = arith.constant dense<0.000000e+00> : vector<256x128xf32>
    %2 = tpu.matmul %0, %1, %cst {dimension_numbers = #tpu.dot_dimension_numbers<[1], [0], [0], [1], [0, 0, 1, 1], [], []>} : vector<256x128xbf16>, vector<128x128xbf16>, vector<256x128xf32> -> vector<256x128xf32>
    %c0_3 = arith.constant 0 : index
    %c0_4 = arith.constant 0 : index
    %3 = vector.load %arg3[%c0_3, %c0_4] : memref<256x1xf32, #tpu.memory_space<vmem>>, vector<256x1xf32>
    %4 = vector.broadcast %3 : vector<256x1xf32> to vector<256x128xf32>
    %5 = arith.addf %2, %4 : vector<256x128xf32>
    %cst_5 = arith.constant 0.000000e+00 : f32
    %6 = vector.broadcast %cst_5 : f32 to vector<256x128xf32>
    %7 = arith.maximumf %5, %6 : vector<256x128xf32>
    %8 = arith.truncf %7 : vector<256x128xf32> to vector<256x128xbf16>
    %c0_6 = arith.constant 0 : index
    %c0_7 = arith.constant 0 : index
    %9 = vector.load %arg4[%c0_6, %c0_7] : memref<8x256xbf16, #tpu.memory_space<vmem>>, vector<8x256xbf16>
    %cst_8 = arith.constant dense<0.000000e+00> : vector<8x128xf32>
    %10 = tpu.matmul %9, %8, %cst_8 {dimension_numbers = #tpu.dot_dimension_numbers<[1], [0], [0], [1], [0, 0, 1, 1], [], []>} : vector<8x256xbf16>, vector<256x128xbf16>, vector<8x128xf32> -> vector<8x128xf32>
    %c0_9 = arith.constant 0 : index
    %c0_10 = arith.constant 0 : index
    %11 = vector.load %arg5[%c0_9, %c0_10] : memref<1x1xf32, #tpu.memory_space<vmem>>, vector<1x1xf32>
    %12 = vector.broadcast %11 : vector<1x1xf32> to vector<8x128xf32>
    %13 = arith.addf %10, %12 : vector<8x128xf32>
    %c0_11 = arith.constant 0 : index
    %c0_12 = arith.constant 0 : index
    %14 = vector.load %arg6[%c0_11, %c0_12] : memref<8x128xf32, #tpu.memory_space<vmem>>, vector<8x128xf32>
    tpu.vector_store %arg6[%c0_11, %c0_12], %13 {strides = array<i32>} : memref<8x128xf32, #tpu.memory_space<vmem>>, vector<8x128xf32>,
    return
  }
  func.func @transform_0(%arg0: i32) -> (i32, i32) {
    %c0_i32 = arith.constant 0 : i32
    %c0_i32_0 = arith.constant 0 : i32
    return %c0_i32, %arg0 : i32, i32
  }
  func.func @transform_1(%arg0: i32) -> (i32, i32) {
    %c0_i32 = arith.constant 0 : i32
    %c0_i32_0 = arith.constant 0 : i32
    %c0_i32_1 = arith.constant 0 : i32
    return %c0_i32, %c0_i32_0 : i32, i32
  }
  func.func @transform_2(%arg0: i32) -> (i32, i32) {
    %c0_i32 = arith.constant 0 : i32
    %c0_i32_0 = arith.constant 0 : i32
    %c0_i32_1 = arith.constant 0 : i32
    return %c0_i32, %c0_i32_0 : i32, i32
  }
  func.func @transform_3(%arg0: i32) -> (i32, i32) {
    %c0_i32 = arith.constant 0 : i32
    %c0_i32_0 = arith.constant 0 : i32
    %c0_i32_1 = arith.constant 0 : i32
    return %c0_i32, %c0_i32_0 : i32, i32
  }
  func.func @transform_4(%arg0: i32) -> (i32, i32) {
    %c0_i32 = arith.constant 0 : i32
    %c0_i32_0 = arith.constant 0 : i32
    %c0_i32_1 = arith.constant 0 : i32
    return %c0_i32, %c0_i32_0 : i32, i32
  }
  func.func @transform_5(%arg0: i32) -> (i32, i32) {
    %c0_i32 = arith.constant 0 : i32
    %c0_i32_0 = arith.constant 0 : i32
    return %c0_i32, %arg0 : i32, i32
  }
}

</mosaic_0001>

<bundles_post_ra>
// kernel: forward.1
= control target key start
LH: loop header
LB: loop body
LE: loop exit
PB: predicated region body
PF: predicated region fallthrough
CT: control target
= control target key end

     0   :  { %s1085_s0 = inlined_call_operand.vmem [shape: bf16[128,1], index: 0, kind: input, shape index: {}]   ;;  %s1086_s1 = inlined_call_operand.hbm [shape: bf16[256,128], index: 1, kind: input, shape index: {}]   ;;  %s1087_s2 = inlined_call_operand.hbm [shape: f32[256,1], index: 2, kind: input, shape index: {}]   ;;  %s1088_s3 = inlined_call_operand.vmem [shape: bf16[8,256], index: 3, kind: input, shape index: {}]   ;;  %s1089_s4 = inlined_call_operand.<no memory space> [shape: f32[1,1], index: 4, kind: input, shape index: {}]   ;;  %s1090_s5 = inlined_call_operand.vmem [shape: f32[8,1], index: 5, kind: output, shape index: {}]  }
   0x1   :  { %v10_v0 = vstv %s1089_s4 }
   0x2   :  { %11 = vst [vmem:[#allocation2] sm:$0x1] %v10_v0 }
   0x3   :  { %12 = vsyncpa [#allocation4], 0 }
   0x4   :  { %13 = vsyncpa [#allocation6], 0  ;;  %s913_s20 = smov [#allocation3]   ;;  %s865_s24 = scalar_lea.hbm %s1086_s1, 2048 }
   0x5   :  { %s21_s21 = sshll.u32 %s913_s20, 4  ;;  %p866_p0 = scmp.ne.s32.totalorder %s1086_s1, %s865_s24  ;;  %s22_s21 = int_to_ptr.vmem [resolvable:$true] %s21_s21 }
   0x6   :  { %p869_p1 = scmp.lt.u32.totalorder %s865_s24, %s1086_s1 }
   0x8   :  { %p871_p2 = pnand %p869_p1, %p866_p0 }
   0xa   :  { %874 = shalt.err (!%p871_p2)
}
   0xb   :  { %s875_s4 = scalar_lea.vmem %s22_s21, 2048  ;;  %p880_p4 = scmp.lt.s32.totalorder %s22_s21, %s22_s21 }
   0xc   :  { %p876_p3 = scmp.ne.s32.totalorder %s22_s21, %s875_s4  ;;  %p881_p5 = scmp.lt.s32.totalorder %s875_s4, %s875_s4 }
   0xe   :  { %p882_p6 = por %p881_p5, %p880_p4 }
  0x10   :  { %p883_p7 = pnand %p882_p6, %p876_p3 }
  0x12   :  { %886 = shalt.err (!%p883_p7)
}
  0x13   :  { %s914_s29 = smov 64   ;;  %s915_s30 = smov 4  }
  0x14   :  { %27 = dma.hbm_to_vmem [thread:$0]  %s1086_s1, 2048, %s22_s21, [#allocation4], %s914_s29, %s914_s29, %s915_s30  }
  0x15   :  { %s916_s8 = smov [#allocation5]   ;;  %s887_s12 = scalar_lea.hbm %s1087_s2, 4096 }
  0x16   :  { %s33_s9 = sshll.u32 %s916_s8, 4  ;;  %p888_p8 = scmp.ne.s32.totalorder %s1087_s2, %s887_s12  ;;  %s34_s9 = int_to_ptr.vmem [resolvable:$true] %s33_s9 }
  0x17   :  { %p891_p9 = scmp.lt.u32.totalorder %s887_s12, %s1087_s2 }
  0x19   :  { %p893_p10 = pnand %p891_p9, %p888_p8 }
  0x1b   :  { %896 = shalt.err (!%p893_p10)
}
  0x1c   :  { %s897_s17 = scalar_lea.vmem %s34_s9, 4096  ;;  %p902_p12 = scmp.lt.s32.totalorder %s34_s9, %s34_s9 }
  0x1d   :  { %p898_p11 = scmp.ne.s32.totalorder %s34_s9, %s897_s17  ;;  %p903_p13 = scmp.lt.s32.totalorder %s897_s17, %s897_s17 }
  0x1f   :  { %p904_p0 = por %p903_p13, %p902_p12 }
  0x21   :  { %p905_p1 = pnand %p904_p0, %p898_p11 }
  0x23   :  { %908 = shalt.err (!%p905_p1)
}
  0x24   :  { %s917_s1 = smov 128   ;;  %s918_s18 = smov 8  }
  0x25   :  { %39 = dma.hbm_to_vmem [thread:$0]  %s1087_s2, 4096, %s34_s9, [#allocation6], %s917_s1, %s917_s1, %s918_s18  }
  0x26   :  { %909 = dma.done.wait [#allocation4], 2048  }
  0x27   :  { %910 = vsyncadd [#allocation4], 4294965248 }
  0x28   :  { %911 = dma.done.wait [#allocation6], 4096  }
  0x29   :  { %912 = vsyncadd [#allocation6], 4294963200  ;;  %v919_v1 = vmov 0   ;;  %v839_v2 = vld [vmem:[%s1085_s0] sm:$0xff]   ;;  %v840_v3 = vld [vmem:[%s1085_s0 + $0x8] sm:$0xff]  }
  0x2a   :  { %837 = vset.pattern.permute.xlu0 %v919_v1  ;;  %838 = vset.pattern.permute.xlu1 %v919_v1  ;;  %v841_v4 = vld [vmem:[%s1085_s0 + $0x10] sm:$0xff]   ;;  %v842_v5 = vld [vmem:[%s1085_s0 + $0x18] sm:$0xff]   ;;  %v847_v6 = vld [vmem:[#allocation3] sm:$0xff]  }
  0x2b   :  { %782 = vmatprep.subr.bf16.mxu0 %v839_v2  ;;  %798 = vmatprep.mubr.bf16.mxu0 %v847_v6  ;;  %v843_v7 = vld [vmem:[%s1085_s0 + $0x20] sm:$0xff]   ;;  %v844_v9 = vld [vmem:[%s1085_s0 + $0x28] sm:$0xff]   ;;  %v845_v13 = vld [vmem:[%s1085_s0 + $0x30] sm:$0xff]  }
  0x2c   :  { %783 = vmatpush3.bf16.msra.mxu0 %v839_v2  ;;  %v115_v8 = vld [vmem:[#allocation5 + $0x80] sm:$0xff]  ;;  %v116_v11 = vld [vmem:[#allocation5 + $0x88] sm:$0xff]  ;;  %v117_v14 = vld [vmem:[#allocation5 + $0x90] sm:$0xff] }
  0x2d   :  { %784 = vmatprep.subr.bf16.mxu0 %v840_v3  ;;  %213 = vperm.xlu0 %837, %v115_v8   ;;  %v99_v10 = vld [vmem:[#allocation5] sm:$0xff]  ;;  %v100_v12 = vld [vmem:[#allocation5 + $0x8] sm:$0xff]  ;;  %v118_v15 = vld [vmem:[#allocation5 + $0x98] sm:$0xff] }
  0x2e   :  { %133 = vperm.xlu1 %838, %v99_v10   ;;  %v846_v16 = vld [vmem:[%s1085_s0 + $0x38] sm:$0xff]   ;;  %v119_v19 = vld [vmem:[#allocation5 + $0xa0] sm:$0xff]  ;;  %v848_v20 = vld [vmem:[#allocation3 + $0x8] sm:$0xff]  }
  0x2f   :  { %v101_v17 = vld [vmem:[#allocation5 + $0x10] sm:$0xff]  ;;  %v102_v18 = vld [vmem:[#allocation5 + $0x18] sm:$0xff]  ;;  %v120_v21 = vld [vmem:[#allocation5 + $0xa8] sm:$0xff] }
  0x30   :  { %785 = vmatpush3.bf16.msra.mxu0 %v840_v3  ;;  %v849_v22 = vld [vmem:[#allocation3 + $0x10] sm:$0xff]   ;;  %v103_v23 = vld [vmem:[#allocation5 + $0x20] sm:$0xff]  ;;  %v104_v24 = vld [vmem:[#allocation5 + $0x28] sm:$0xff] }
  0x31   :  { %786 = vmatprep.subr.bf16.mxu0 %v841_v4  ;;  %218 = vperm.xlu0 %837, %v116_v11   ;;  %v121_v25 = vld [vmem:[#allocation5 + $0xb0] sm:$0xff]  ;;  %v850_v26 = vld [vmem:[#allocation3 + $0x18] sm:$0xff]   ;;  %v851_v28 = vld [vmem:[#allocation3 + $0x20] sm:$0xff]  }
  0x32   :  { %138 = vperm.xlu1 %838, %v100_v12   ;;  %v122_v27 = vld [vmem:[#allocation5 + $0xb8] sm:$0xff]  ;;  %v105_v29 = vld [vmem:[#allocation5 + $0x30] sm:$0xff]  ;;  %v123_v31 = vld [vmem:[#allocation5 + $0xc0] sm:$0xff] }
  0x33   :  { %v106_v30 = vld [vmem:[#allocation5 + $0x38] sm:$0xff]  ;;  %v852_v32 = vld [vmem:[#allocation3 + $0x28] sm:$0xff]   ;;  %v853_v34 = vld [vmem:[#allocation3 + $0x30] sm:$0xff]  }
  0x34   :  { %787 = vmatpush3.bf16.msra.mxu0 %v841_v4  ;;  %v124_v33 = vld [vmem:[#allocation5 + $0xc8] sm:$0xff]  ;;  %v107_v35 = vld [vmem:[#allocation5 + $0x40] sm:$0xff]  ;;  %v125_v37 = vld [vmem:[#allocation5 + $0xd0] sm:$0xff] }
  0x35   :  { %788 = vmatprep.subr.bf16.mxu0 %v842_v5  ;;  %223 = vperm.xlu0 %837, %v117_v14   ;;  %v108_v36 = vld [vmem:[#allocation5 + $0x48] sm:$0xff]  ;;  %v854_v38 = vld [vmem:[#allocation3 + $0x38] sm:$0xff]   ;;  %v855_v40 = vld [vmem:[#allocation3 + $0x40] sm:$0xff]  }
  0x36   :  { %228 = vperm.xlu1 %838, %v118_v15   ;;  %v126_v39 = vld [vmem:[#allocation5 + $0xd8] sm:$0xff]  ;;  %v109_v41 = vld [vmem:[#allocation5 + $0x50] sm:$0xff]  ;;  %v127_v43 = vld [vmem:[#allocation5 + $0xe0] sm:$0xff] }
  0x37   :  { %v110_v42 = vld [vmem:[#allocation5 + $0x58] sm:$0xff]  ;;  %v856_v44 = vld [vmem:[#allocation3 + $0x48] sm:$0xff]   ;;  %v857_v46 = vld [vmem:[#allocation3 + $0x50] sm:$0xff]  }
  0x38   :  { %789 = vmatpush3.bf16.msra.mxu0 %v842_v5  ;;  %v128_v45 = vld [vmem:[#allocation5 + $0xe8] sm:$0xff]  ;;  %v111_v47 = vld [vmem:[#allocation5 + $0x60] sm:$0xff]  ;;  %v129_v49 = vld [vmem:[#allocation5 + $0xf0] sm:$0xff] }
  0x39   :  { %790 = vmatprep.subr.bf16.mxu0 %v843_v7  ;;  %143 = vperm.xlu0 %837, %v101_v17   ;;  %v112_v48 = vld [vmem:[#allocation5 + $0x68] sm:$0xff]  ;;  %v858_v50 = vld [vmem:[#allocation3 + $0x58] sm:$0xff]   ;;  %v859_v52 = vld [vmem:[#allocation3 + $0x60] sm:$0xff]  }
  0x3a   :  { %148 = vperm.xlu1 %838, %v102_v18   ;;  %v130_v51 = vld [vmem:[#allocation5 + $0xf8] sm:$0xff]  ;;  %v113_v53 = vld [vmem:[#allocation5 + $0x70] sm:$0xff]  ;;  %v860_v56 = vld [vmem:[#allocation3 + $0x68] sm:$0xff]  }
  0x3b   :  { %v114_v54 = vld [vmem:[#allocation5 + $0x78] sm:$0xff]  ;;  %v861_v57 = vld [vmem:[#allocation3 + $0x70] sm:$0xff]  }
  0x3c   :  { %791 = vmatpush3.bf16.msra.mxu0 %v843_v7  ;;  %v733_v55 = vld [vmem:[#allocation2] ss:$0 sm:$0xff] }
  0x3d   :  { %792 = vmatprep.subr.bf16.mxu0 %v844_v9  ;;  %233 = vperm.xlu0 %837, %v119_v19   ;;  %v862_v58 = vld [vmem:[#allocation3 + $0x78] sm:$0xff]  }
  0x3e   :  { %238 = vperm.xlu1 %838, %v120_v21   ;;  %v1008_v63 = vld [vmem:[%s1088_s3] sm:$0xff] }
  0x3f   :  { %v735_v0 = vcombine.high %v1008_v63, %v1008_v63 }
  0x40   :  { %793 = vmatpush3.bf16.msra.mxu0 %v844_v9 }
  0x41   :  { %794 = vmatprep.subr.bf16.mxu0 %v845_v13  ;;  %153 = vperm.xlu0 %837, %v103_v23  }
  0x42   :  { %158 = vperm.xlu1 %838, %v104_v24   ;;  %694 = vmatprep.mubr.bf16.mxu1 %v735_v0 }
  0x44   :  { %795 = vmatpush3.bf16.msra.mxu0 %v845_v13 }
  0x45   :  { %796 = vmatprep.subr.bf16.mxu0 %v846_v16  ;;  %243 = vperm.xlu0 %837, %v121_v25  }
  0x46   :  { %248 = vperm.xlu1 %838, %v122_v27  }
  0x48   :  { %797 = vmatpush3.bf16.msra.mxu0 %v846_v16 }
  0x49   :  { %163 = vperm.xlu0 %837, %v105_v29  }
  0x4a   :  { %168 = vperm.xlu1 %838, %v106_v30  }
  0x4b   :  { %799 = vmatmul.mubr.bf16.vlgmr.msra.gmra.mrb[0].mxu0 %v848_v20 }
  0x4c   :  { %802 = vmatprep.mubr.bf16.mxu0 %v849_v22 }
  0x4d   :  { %253 = vperm.xlu0 %837, %v123_v31  }
  0x4e   :  { %258 = vperm.xlu1 %838, %v124_v33  }
  0x51   :  { %173 = vperm.xlu0 %837, %v107_v35  }
  0x52   :  { %178 = vperm.xlu1 %838, %v108_v36  }
  0x53   :  { %803 = vmatmul.mubr.bf16.gmra.mrb[4].mxu0 %v850_v26 }
  0x54   :  { %806 = vmatprep.mubr.bf16.mxu0 %v851_v28 }
  0x55   :  { %263 = vperm.xlu0 %837, %v125_v37  }
  0x56   :  { %268 = vperm.xlu1 %838, %v126_v39  }
  0x59   :  { %183 = vperm.xlu0 %837, %v109_v41  }
  0x5a   :  { %188 = vperm.xlu1 %838, %v110_v42  }
  0x5b   :  { %807 = vmatmul.mubr.bf16.gmra.mrb[8].mxu0 %v852_v32 }
  0x5c   :  { %810 = vmatprep.mubr.bf16.mxu0 %v853_v34 }
  0x5d   :  { %273 = vperm.xlu0 %837, %v127_v43  }
  0x5e   :  { %278 = vperm.xlu1 %838, %v128_v45  }
  0x61   :  { %193 = vperm.xlu0 %837, %v111_v47  }
  0x62   :  { %198 = vperm.xlu1 %838, %v112_v48  }
  0x63   :  { %811 = vmatmul.mubr.bf16.gmra.mrb[12].mxu0 %v854_v38 }
  0x64   :  { %814 = vmatprep.mubr.bf16.mxu0 %v855_v40 }
  0x65   :  { %283 = vperm.xlu0 %837, %v129_v49  }
  0x66   :  { %288 = vperm.xlu1 %838, %v130_v51  }
  0x69   :  { %203 = vperm.xlu0 %837, %v113_v53  }
  0x6a   :  { %208 = vperm.xlu1 %838, %v114_v54  }
  0x6b   :  { %815 = vmatmul.mubr.bf16.gmra.mrb[16].mxu0 %v856_v44 }
  0x6c   :  { %818 = vmatprep.mubr.bf16.mxu0 %v857_v46 }
  0x6d   :  { %652 = vperm.xlu0 %837, %v733_v55  }
  0x73   :  { %819 = vmatmul.mubr.bf16.gmra.mrb[20].mxu0 %v858_v50 }
  0x74   :  { %822 = vmatprep.mubr.bf16.mxu0 %v859_v52 }
  0x7b   :  { %823 = vmatmul.mubr.bf16.gmra.mrb[24].mxu0 %v860_v56 }
  0x7c   :  { %826 = vmatprep.mubr.bf16.mxu0 %v861_v57 }
  0x83   :  { %827 = vmatmul.mubr.bf16.gmra.mrb[28].mxu0 %v862_v58 }
  0xac   :  { %v1001_v59 = vpop.permute.xlu0 %213 }
  0xad   :  { %v134_v60 = vpop.permute.xlu1 %133 }
  0xb0   :  { %v1003_v61 = vpop.permute.xlu0 %218 }
  0xb1   :  { %v139_v62 = vpop.permute.xlu1 %138 }
  0xb4   :  { %v1012_v1 = vpop.permute.xlu0 %223 }
  0xb5   :  { %v1014_v2 = vpop.permute.xlu1 %228 }
  0xb8   :  { %v144_v3 = vpop.permute.xlu0 %143 }
  0xb9   :  { %v149_v4 = vpop.permute.xlu1 %148 }
  0xbc   :  { %v1016_v5 = vpop.permute.xlu0 %233 }
  0xbd   :  { %v1018_v6 = vpop.permute.xlu1 %238 }
  0xc0   :  { %v154_v7 = vpop.permute.xlu0 %153 }
  0xc1   :  { %v159_v8 = vpop.permute.xlu1 %158 }
  0xc4   :  { %v1020_v9 = vpop.permute.xlu0 %243 }
  0xc5   :  { %v1022_v10 = vpop.permute.xlu1 %248 }
  0xc8   :  { %v164_v11 = vpop.permute.xlu0 %163 }
  0xc9   :  { %v169_v12 = vpop.permute.xlu1 %168 }
  0xcc   :  { %v1024_v13 = vpop.permute.xlu0 %253 }
  0xcd   :  { %v1026_v14 = vpop.permute.xlu1 %258 }
  0xd0   :  { %v174_v15 = vpop.permute.xlu0 %173 }
  0xd1   :  { %v179_v16 = vpop.permute.xlu1 %178 }
  0xd4   :  { %v1028_v17 = vpop.permute.xlu0 %263 }
  0xd5   :  { %v1030_v18 = vpop.permute.xlu1 %268 }
  0xd8   :  { %v184_v19 = vpop.permute.xlu0 %183 }
  0xd9   :  { %v189_v23 = vpop.permute.xlu1 %188 }
  0xdc   :  { %v1032_v31 = vpop.permute.xlu0 %273 }
  0xdd   :  { %v1036_v35 = vpop.permute.xlu1 %278 }
  0xe0   :  { %v194_v44 = vpop.permute.xlu0 %193 }
  0xe1   :  { %v199_v48 = vpop.permute.xlu1 %198 }
  0xe4   :  { %v1044_v56 = vpop.permute.xlu0 %283 }
  0xe5   :  { %v1046_v0 = vpop.permute.xlu1 %288 }
 0x11e   :  { %v800_v20 = vpop.f32.mrb[0].mxu0 }
 0x11f   :  { %v478_v21 = vadd.f32 %v800_v20, %v144_v3  ;;  %v469_v22 = vpop.f32.mrb[1].mxu0  ;;  %v204_v20 = vpop.permute.xlu0 %203 }
 0x120   :  { %v470_v24 = vadd.f32 %v469_v22, %v134_v60  ;;  %v801_v25 = vpop.f32.mrb[2].mxu0 }
 0x121   :  { %v481_v26 = vadd.f32 %v801_v25, %v149_v4  ;;  %v472_v27 = vpop.f32.mrb[3].mxu0  ;;  %v598_v29 = vmax.f32 %v478_v21, 0.0  ;;  %v209_v25 = vpop.permute.xlu1 %208 }
 0x122   :  { %v473_v28 = vadd.f32 %v472_v27, %v139_v62  ;;  %v596_v32 = vmax.f32 %v470_v24, 0.0 }
 0x123   :  { %v599_v30 = vmax.f32 %v481_v26, 0.0 }
 0x124   :  { %v597_v33 = vmax.f32 %v473_v28, 0.0 }
 0x125   :  { %v1034_v34 = vpack.c.bf16 %v599_v30, %v598_v29 }
 0x126   :  { %v804_v36 = vpop.f32.mrb[4].mxu0  ;;  %v1038_v37 = vpack.c.bf16 %v597_v33, %v596_v32 }
 0x127   :  { %v494_v38 = vadd.f32 %v804_v36, %v164_v11  ;;  %v485_v39 = vpop.f32.mrb[5].mxu0 }
 0x128   :  { %v486_v40 = vadd.f32 %v485_v39, %v154_v7  ;;  %v805_v41 = vpop.f32.mrb[6].mxu0 }
 0x129   :  { %v497_v42 = vadd.f32 %v805_v41, %v169_v12  ;;  %v488_v43 = vpop.f32.mrb[7].mxu0  ;;  %v602_v46 = vmax.f32 %v494_v38, 0.0 }
 0x12a   :  { %v489_v45 = vadd.f32 %v488_v43, %v159_v8  ;;  %v600_v49 = vmax.f32 %v486_v40, 0.0 }
 0x12b   :  { %v603_v47 = vmax.f32 %v497_v42, 0.0 }
 0x12c   :  { %v601_v50 = vmax.f32 %v489_v45, 0.0 }
 0x12d   :  { %v1040_v51 = vpack.c.bf16 %v603_v47, %v602_v46 }
 0x12e   :  { %v1042_v52 = vpack.c.bf16 %v601_v50, %v600_v49  ;;  %v808_v53 = vpop.f32.mrb[8].mxu0 }
 0x12f   :  { %v510_v54 = vadd.f32 %v808_v53, %v184_v19  ;;  %v501_v55 = vpop.f32.mrb[9].mxu0 }
 0x130   :  { %v502_v57 = vadd.f32 %v501_v55, %v174_v15  ;;  %v809_v58 = vpop.f32.mrb[10].mxu0 }
 0x131   :  { %v513_v60 = vadd.f32 %v809_v58, %v189_v23  ;;  %v504_v62 = vpop.f32.mrb[11].mxu0  ;;  %v606_v4 = vmax.f32 %v510_v54, 0.0 }
 0x132   :  { %v505_v3 = vadd.f32 %v504_v62, %v179_v16  ;;  %v604_v8 = vmax.f32 %v502_v57, 0.0 }
 0x133   :  { %v607_v7 = vmax.f32 %v513_v60, 0.0 }
 0x134   :  { %v605_v11 = vmax.f32 %v505_v3, 0.0 }
 0x135   :  { %v1048_v12 = vpack.c.bf16 %v607_v7, %v606_v4 }
 0x136   :  { %v1050_v21 = vpack.c.bf16 %v605_v11, %v604_v8  ;;  %v812_v19 = vpop.f32.mrb[12].mxu0 }
 0x137   :  { %v526_v22 = vadd.f32 %v812_v19, %v204_v20  ;;  %v517_v24 = vpop.f32.mrb[13].mxu0 }
 0x138   :  { %v518_v15 = vadd.f32 %v517_v24, %v194_v44  ;;  %v813_v26 = vpop.f32.mrb[14].mxu0 }
 0x139   :  { %v529_v23 = vadd.f32 %v813_v26, %v209_v25  ;;  %v520_v27 = vpop.f32.mrb[15].mxu0  ;;  %v610_v29 = vmax.f32 %v526_v22, 0.0 }
 0x13a   :  { %v521_v28 = vadd.f32 %v520_v27, %v199_v48  ;;  %v608_v30 = vmax.f32 %v518_v15, 0.0 }
 0x13b   :  { %v611_v16 = vmax.f32 %v529_v23, 0.0 }
 0x13c   :  { %v609_v32 = vmax.f32 %v521_v28, 0.0 }
 0x13d   :  { %v1052_v33 = vpack.c.bf16 %v611_v16, %v610_v29 }
 0x13e   :  { %v1054_v36 = vpack.c.bf16 %v609_v32, %v608_v30  ;;  %v816_v38 = vpop.f32.mrb[16].mxu0 }
 0x13f   :  { %v542_v39 = vadd.f32 %v816_v38, %v1012_v1  ;;  %v533_v40 = vpop.f32.mrb[17].mxu0 }
 0x140   :  { %v534_v41 = vadd.f32 %v533_v40, %v1001_v59  ;;  %v817_v42 = vpop.f32.mrb[18].mxu0 }
 0x141   :  { %v545_v43 = vadd.f32 %v817_v42, %v1014_v2  ;;  %v536_v44 = vpop.f32.mrb[19].mxu0  ;;  %v614_v46 = vmax.f32 %v542_v39, 0.0  ;;  %v653_v39 = vpop.permute.xlu0 %652 }
 0x142   :  { %v537_v45 = vadd.f32 %v536_v44, %v1003_v61  ;;  %v612_v48 = vmax.f32 %v534_v41, 0.0 }
 0x143   :  { %v615_v47 = vmax.f32 %v545_v43, 0.0 }
 0x144   :  { %v613_v49 = vmax.f32 %v537_v45, 0.0 }
 0x145   :  { %v637_v50 = vpack.c.bf16 %v615_v47, %v614_v46 }
 0x146   :  { %v820_v53 = vpop.f32.mrb[20].mxu0  ;;  %v636_v54 = vpack.c.bf16 %v613_v49, %v612_v48 }
 0x147   :  { %v558_v55 = vadd.f32 %v820_v53, %v1020_v9  ;;  %v549_v57 = vpop.f32.mrb[21].mxu0 }
 0x148   :  { %v550_v1 = vadd.f32 %v549_v57, %v1016_v5  ;;  %v821_v58 = vpop.f32.mrb[22].mxu0  ;;  %760 = vmatprep.subr.bf16.mxu1 %v636_v54 }
 0x149   :  { %v561_v59 = vadd.f32 %v821_v58, %v1022_v10  ;;  %v552_v2 = vpop.f32.mrb[23].mxu0  ;;  %761 = vmatpush3.bf16.msra.mxu1 %v1038_v37  ;;  %v618_v60 = vmax.f32 %v558_v55, 0.0 }
 0x14a   :  { %v553_v61 = vadd.f32 %v552_v2, %v1018_v6  ;;  %762 = vmatprep.subr.bf16.mxu1 %v637_v50  ;;  %v616_v3 = vmax.f32 %v550_v1, 0.0 }
 0x14b   :  { %v619_v62 = vmax.f32 %v561_v59, 0.0 }
 0x14c   :  { %v617_v4 = vmax.f32 %v553_v61, 0.0 }
 0x14d   :  { %v639_v7 = vpack.c.bf16 %v619_v62, %v618_v60  ;;  %763 = vmatpush3.bf16.msra.mxu1 %v1034_v34 }
 0x14e   :  { %v638_v9 = vpack.c.bf16 %v617_v4, %v616_v3  ;;  %v824_v8 = vpop.f32.mrb[24].mxu0 }
 0x14f   :  { %v574_v5 = vadd.f32 %v824_v8, %v1028_v17  ;;  %v565_v11 = vpop.f32.mrb[25].mxu0 }
 0x150   :  { %v566_v10 = vadd.f32 %v565_v11, %v1024_v13  ;;  %v825_v20 = vpop.f32.mrb[26].mxu0  ;;  %764 = vmatprep.subr.bf16.mxu1 %v638_v9 }
 0x151   :  { %v577_v37 = vadd.f32 %v825_v20, %v1030_v18  ;;  %v568_v6 = vpop.f32.mrb[27].mxu0  ;;  %765 = vmatpush3.bf16.msra.mxu1 %v1042_v52  ;;  %v622_v22 = vmax.f32 %v574_v5, 0.0 }
 0x152   :  { %v569_v19 = vadd.f32 %v568_v6, %v1026_v14  ;;  %766 = vmatprep.subr.bf16.mxu1 %v639_v7  ;;  %v620_v34 = vmax.f32 %v566_v10, 0.0 }
 0x153   :  { %v623_v24 = vmax.f32 %v577_v37, 0.0 }
 0x154   :  { %v621_v25 = vmax.f32 %v569_v19, 0.0 }
 0x155   :  { %v641_v15 = vpack.c.bf16 %v623_v24, %v622_v22  ;;  %767 = vmatpush3.bf16.msra.mxu1 %v1040_v51 }
 0x156   :  { %v640_v17 = vpack.c.bf16 %v621_v25, %v620_v34  ;;  %v828_v26 = vpop.f32.mrb[28].mxu0 }
 0x157   :  { %v590_v13 = vadd.f32 %v828_v26, %v1044_v56  ;;  %v581_v23 = vpop.f32.mrb[29].mxu0 }
 0x158   :  { %v582_v18 = vadd.f32 %v581_v23, %v1032_v31  ;;  %v829_v27 = vpop.f32.mrb[30].mxu0  ;;  %768 = vmatprep.subr.bf16.mxu1 %v640_v17  ;;  %v734_v31 = vcombine.low %v1008_v63, %v1008_v63 }
 0x159   :  { %v593_v52 = vadd.f32 %v829_v27, %v1046_v0  ;;  %v584_v14 = vpop.f32.mrb[31].mxu0  ;;  %769 = vmatpush3.bf16.msra.mxu1 %v1050_v21  ;;  %v626_v29 = vmax.f32 %v590_v13, 0.0 }
 0x15a   :  { %v585_v28 = vadd.f32 %v584_v14, %v1036_v35  ;;  %770 = vmatprep.subr.bf16.mxu1 %v641_v15  ;;  %v624_v51 = vmax.f32 %v582_v18, 0.0 }
 0x15b   :  { %v627_v16 = vmax.f32 %v593_v52, 0.0 }
 0x15c   :  { %v625_v30 = vmax.f32 %v585_v28, 0.0 }
 0x15d   :  { %v643_v32 = vpack.c.bf16 %v627_v16, %v626_v29  ;;  %771 = vmatpush3.bf16.msra.mxu1 %v1048_v12 }
 0x15e   :  { %v642_v56 = vpack.c.bf16 %v625_v30, %v624_v51 }
 0x160   :  { %772 = vmatprep.subr.bf16.mxu1 %v642_v56 }
 0x161   :  { %773 = vmatpush3.bf16.msra.mxu1 %v1054_v36 }
 0x162   :  { %774 = vmatprep.subr.bf16.mxu1 %v643_v32 }
 0x165   :  { %775 = vmatpush3.bf16.msra.mxu1 %v1052_v33 }
 0x168   :  { %695 = vmatmul.mubr.bf16.vlgmr.msra.gmra.mrb[0].mxu1 %v734_v31 }
 0x23b   :  { %v776_v35 = vpop.f32.mrb[0].mxu1 }
 0x23c   :  { %v777_v0 = vpop.f32.mrb[1].mxu1 }
 0x23d   :  { %v778_v21 = vadd.f32 %v777_v0, %v776_v35  ;;  %v779_v38 = vpop.f32.mrb[2].mxu1 }
 0x23e   :  { %v780_v40 = vpop.f32.mrb[3].mxu1 }
 0x23f   :  { %v697_v41 = vadd.f32 %v778_v21, %v653_v39 }
 0x241   :  { %702 = vst [vmem:[%s1090_s5] sm:$0xff] %v697_v41 }
 0x242   :  { %707 = vsyncpa [#allocation4], 1 }
 0x243   :  { %708 = vsyncpa [#allocation6], 1 }

</bundles_post_ra>
